<compile_context>
chip_gen: v7x
topology: tpu7x:2x2x1
jax: 0.10.0
libtpu: 0.0.40
codegen_flags: <defaults>
</compile_context>

<pallas_src>
import functools

import jax
import jax.numpy as jnp
from jax.experimental import pallas as pl
from jax.experimental.pallas import tpu as pltpu


def _round_up(n, m):
    return ((n + m - 1) // m) * m


# ----------------------------- Pallas kernels ------------------------------

def _dqn_dueling_kernel(x_ref, w1_ref, b1_ref, w2_ref, b2_ref,
                        wh_ref, bh_ref, amask_ref, q_ref, *, action_dim):
    # Matmul operands in the (bf16) weight dtype; accumulate + elementwise f32.
    x = x_ref[...].astype(w1_ref.dtype)
    h1 = jnp.dot(x, w1_ref[...], preferred_element_type=jnp.float32) + b1_ref[...]
    h1 = jnp.maximum(h1, 0.0)
    h2 = jnp.dot(h1.astype(w2_ref.dtype), w2_ref[...],
                 preferred_element_type=jnp.float32) + b2_ref[...]
    h2 = jnp.maximum(h2, 0.0)

    # Fused heads (single MXU pass): columns [0, action_dim) = advantage,
    # column action_dim = value, remaining padded columns are exactly zero.
    va = jnp.dot(h2.astype(wh_ref.dtype), wh_ref[...],
                 preferred_element_type=jnp.float32) + bh_ref[...]

    # Value: static slice (action_dim is a Python constant).
    v = va[:, action_dim:action_dim + 1]
    # Advantage mean: constant column mask (1.0 for cols < action_dim) keeps
    # padded lanes out; multiply by a Python-constant reciprocal (no divide).
    a_mean = (jnp.sum(va * amask_ref[...], axis=-1, keepdims=True)
              * (1.0 / action_dim))

    # For columns < action_dim this is a + v - mean(a); other columns are
    # padding and get sliced off in the wrapper.
    q_ref[...] = va + v - a_mean


def _dqn_plain_kernel(x_ref, w1_ref, b1_ref, w2_ref, b2_ref,
                      w3_ref, b3_ref, q_ref):
    x = x_ref[...].astype(w1_ref.dtype)
    h1 = jnp.dot(x, w1_ref[...], preferred_element_type=jnp.float32) + b1_ref[...]
    h1 = jnp.maximum(h1, 0.0)
    h2 = jnp.dot(h1.astype(w2_ref.dtype), w2_ref[...],
                 preferred_element_type=jnp.float32) + b2_ref[...]
    h2 = jnp.maximum(h2, 0.0)
    q_ref[...] = (jnp.dot(h2.astype(w3_ref.dtype), w3_ref[...],
                          preferred_element_type=jnp.float32) + b3_ref[...])


# ----------------------------- Param packing --------------------------------

def pack_dqn_params(params, dueling, compute_dtype=jnp.bfloat16):
    """Pack raw [in, out] weights into the lane-dense, fused-head layout.

    Call once (not per forward step).  Weights are cast to `compute_dtype`
    (bf16 by default: native MXU rate on v5e/v6e/v7x, half the VMEM/HBM
    footprint); biases stay f32 and are added after the f32-accumulated dot.
    Padded rows/cols are exact zeros so padded hidden units stay identically
    zero through the ReLUs and contribute nothing downstream.
    """
    state_dim, hidden = params["w1"].shape
    hp = _round_up(hidden, 128)

    def pad2(w, rows, cols):
        return jnp.pad(w, ((0, rows - w.shape[0]), (0, cols - w.shape[1])))

    packed = {
        "w1": pad2(params["w1"], state_dim, hp).astype(compute_dtype),
        "b1": pad2(params["b1"], 1, hp),
        "w2": pad2(params["w2"], hp, hp).astype(compute_dtype),
        "b2": pad2(params["b2"], 1, hp),
    }
    if dueling:
        action_dim = params["wa"].shape[1]
        head_pad = _round_up(action_dim + 1, 128)
        wh = jnp.concatenate([params["wa"], params["wv"]], axis=1)  # [A cols | value]
        bh = jnp.concatenate([params["ba"], params["bv"]], axis=1)
        packed["wh"] = pad2(wh, hp, head_pad).astype(compute_dtype)
        packed["bh"] = pad2(bh, 1, head_pad)
        # Constant advantage-column mask, loaded once and VMEM-resident.
        packed["amask"] = (jnp.arange(head_pad) < action_dim
                           ).astype(jnp.float32).reshape(1, head_pad)
    else:
        action_dim = params["w3"].shape[1]
        out_pad = _round_up(action_dim, 128)
        packed["w3"] = pad2(params["w3"], hp, out_pad).astype(compute_dtype)
        packed["b3"] = pad2(params["b3"], 1, out_pad)
    return packed


# ------------------------------- Wrapper ------------------------------------

def _choose_tile_b(batch):
    """Batch tile: multiple of 8 sublanes, as large as possible (per-step
    overhead dominates), capped at 1024 rows; >=2 tiles when batch > 256 so
    v7x's second TensorCore has work (perf-neutral on 1-TC v5e/v6e)."""
    if batch <= 256:
        return _round_up(batch, 8)
    n_tiles = max(2, pl.cdiv(batch, 1024))
    return _round_up(pl.cdiv(batch, n_tiles), 8)


def dqn_forward(x, packed, dueling, action_dim):
    """Run the DQN forward pass as one gridded Pallas kernel.

    x:      [batch, state_dim] float32
    packed: output of pack_dqn_params
    """
    batch, state_dim = x.shape
    tile_b = _choose_tile_b(batch)
    grid = (pl.cdiv(batch, tile_b),)   # ragged edge block is masked by Pallas

    if dueling:
        kernel = functools.partial(_dqn_dueling_kernel, action_dim=action_dim)
        weights = (packed["w1"], packed["b1"], packed["w2"], packed["b2"],
                   packed["wh"], packed["bh"], packed["amask"])
        out_w = packed["wh"].shape[1]
    else:
        kernel = _dqn_plain_kernel
        weights = (packed["w1"], packed["b1"], packed["w2"], packed["b2"],
                   packed["w3"], packed["b3"])
        out_w = packed["w3"].shape[1]

    # Weights/biases/mask: same block index every grid step -> VMEM-resident;
    # only the x tile and the q tile stream per grid step.
    weight_specs = [pl.BlockSpec(w.shape, lambda i: (0, 0)) for w in weights]

    q_pad = pl.pallas_call(
        kernel,
        out_shape=jax.ShapeDtypeStruct((batch, out_w), jnp.float32),
        grid=grid,
        in_specs=[pl.BlockSpec((tile_b, state_dim), lambda i: (i, 0))]
                 + weight_specs,
        out_specs=pl.BlockSpec((tile_b, out_w), lambda i: (i, 0)),
        compiler_params=pltpu.CompilerParams(
            dimension_semantics=("parallel",),     # shard batch tiles across TCs
            vmem_limit_bytes=64 * 1024 * 1024,
        ),
    )(x, *weights)

    return q_pad[:, :action_dim]


# ------------------------- Deterministic parameters --------------------------

def init_dqn_params(key, state_dim, action_dim, hidden_dim, dueling):
    """Deterministic synthetic init (uniform, like PyTorch's default scale)."""
    def linear(k, fan_in, fan_out):
        kw, kb = jax.random.split(k)
        bound = 1.0 / jnp.sqrt(fan_in)
        w = jax.random.uniform(kw, (fan_in, fan_out), jnp.float32, -bound, bound)
        b = jax.random.uniform(kb, (1, fan_out), jnp.float32, -bound, bound)
        return w, b

    keys = jax.random.split(key, 4)
    p = {}
    p["w1"], p["b1"] = linear(keys[0], state_dim, hidden_dim)
    p["w2"], p["b2"] = linear(keys[1], hidden_dim, hidden_dim)
    if dueling:
        p["wv"], p["bv"] = linear(keys[2], hidden_dim, 1)
        p["wa"], p["ba"] = linear(keys[3], hidden_dim, action_dim)
    else:
        p["w3"], p["b3"] = linear(keys[2], hidden_dim, action_dim)
    return p


def dqn_reference(x, params, dueling, matmul_dtype=jnp.float32):
    """Plain-JAX reference mirroring the PyTorch forward.

    `matmul_dtype=jnp.bfloat16` reproduces the kernel's mixed-precision path
    (bf16 matmul operands, f32 accumulation / elementwise)."""
    def mm(a, w):
        return jnp.dot(a.astype(matmul_dtype), w.astype(matmul_dtype),
                       preferred_element_type=jnp.float32)

    h1 = jnp.maximum(mm(x, params["w1"]) + params["b1"], 0.0)
    h2 = jnp.maximum(mm(h1, params["w2"]) + params["b2"], 0.0)
    if dueling:
        v = mm(h2, params["wv"]) + params["bv"]
        a = mm(h2, params["wa"]) + params["ba"]
        return v + a - jnp.mean(a, axis=-1, keepdims=True)
    return mm(h2, params["w3"]) + params["b3"]


# ----------------------------------- Main ------------------------------------

if __name__ == "__main__":
    batch, state_dim, action_dim, hidden_dim = 2, 16, 4, 32

    key = jax.random.PRNGKey(0)
    kx, kp, kx2 = jax.random.split(key, 3)
    x = jax.random.normal(kx, (batch, state_dim), jnp.float32)

    # Dueling path (small batch).
    params = init_dqn_params(kp, state_dim, action_dim, hidden_dim, True)
    packed = pack_dqn_params(params, True)
    q = jax.block_until_ready(dqn_forward(x, packed, True, action_dim))
    assert q.shape == (batch, action_dim)
    # Tight check vs. the same-precision (bf16-matmul) reference ...
    assert jnp.allclose(q, dqn_reference(x, params, True, jnp.bfloat16),
                        atol=2e-3, rtol=2e-3)
    # ... and a loose sanity check vs. the full-f32 reference.
    assert jnp.allclose(q, dqn_reference(x, params, True),
                        atol=5e-2, rtol=5e-2)

    # Larger, non-8-aligned batch: exercises the >=2-tile grid split and the
    # masked ragged edge block (no wrapper-side pad / slice round-trips).
    x_big = jax.random.normal(kx2, (300, state_dim), jnp.float32)
    q_big = jax.block_until_ready(dqn_forward(x_big, packed, True, action_dim))
    assert q_big.shape == (300, action_dim)
    assert jnp.allclose(q_big, dqn_reference(x_big, params, True, jnp.bfloat16),
                        atol=2e-3, rtol=2e-3)

    # Non-dueling path.
    params_nd = init_dqn_params(kp, state_dim, action_dim, hidden_dim, False)
    packed_nd = pack_dqn_params(params_nd, False)
    q_nd = jax.block_until_ready(dqn_forward(x, packed_nd, False, action_dim))
    assert jnp.allclose(q_nd, dqn_reference(x, params_nd, False, jnp.bfloat16),
                        atol=2e-3, rtol=2e-3)

    print("KERNEL_OK")
</pallas_src>

<mosaic_0001>
module attributes {stable_mosaic.version = 11 : i64} {
  func.func @_dqn_dueling_kernel(%arg0: i32, %arg1: memref<8x16xf32, #tpu.memory_space<vmem>>, %arg2: memref<16x128xbf16, #tpu.memory_space<vmem>>, %arg3: memref<1x128xf32, #tpu.memory_space<vmem>>, %arg4: memref<128x128xbf16, #tpu.memory_space<vmem>>, %arg5: memref<1x128xf32, #tpu.memory_space<vmem>>, %arg6: memref<128x128xbf16, #tpu.memory_space<vmem>>, %arg7: memref<1x128xf32, #tpu.memory_space<vmem>>, %arg8: memref<1x128xf32, #tpu.memory_space<vmem>>, %arg9: memref<8x128xf32, #tpu.memory_space<vmem>>) attributes {dimension_semantics = [#tpu.dimension_semantics<parallel>], iteration_bounds = array<i64: 1>, scalar_prefetch = 0 : i64, scratch_operands = 0 : i64, tpu.core_type = #tpu.core_type<tc>, window_params = [{transform_indices = @transform_0, window_bounds = array<i64: 8, 16>}, {pipeline_mode = #tpu.pipeline_mode<synchronous>, transform_indices = @transform_1, window_bounds = array<i64: 16, 128>}, {pipeline_mode = #tpu.pipeline_mode<synchronous>, transform_indices = @transform_2, window_bounds = array<i64: 1, 128>}, {pipeline_mode = #tpu.pipeline_mode<synchronous>, transform_indices = @transform_3, window_bounds = array<i64: 128, 128>}, {pipeline_mode = #tpu.pipeline_mode<synchronous>, transform_indices = @transform_4, window_bounds = array<i64: 1, 128>}, {pipeline_mode = #tpu.pipeline_mode<synchronous>, transform_indices = @transform_5, window_bounds = array<i64: 128, 128>}, {pipeline_mode = #tpu.pipeline_mode<synchronous>, transform_indices = @transform_6, window_bounds = array<i64: 1, 128>}, {pipeline_mode = #tpu.pipeline_mode<synchronous>, transform_indices = @transform_7, window_bounds = array<i64: 1, 128>}, {transform_indices = @transform_8, window_bounds = array<i64: 8, 128>}]} {
    %c0 = arith.constant 0 : index
    %c0_0 = arith.constant 0 : index
    %0 = vector.load %arg1[%c0, %c0_0] : memref<8x16xf32, #tpu.memory_space<vmem>>, vector<8x16xf32>
    %1 = arith.truncf %0 : vector<8x16xf32> to vector<8x16xbf16>
    %c0_1 = arith.constant 0 : index
    %c0_2 = arith.constant 0 : index
    %2 = vector.load %arg2[%c0_1, %c0_2] : memref<16x128xbf16, #tpu.memory_space<vmem>>, vector<16x128xbf16>
    %cst = arith.constant dense<0.000000e+00> : vector<8x128xf32>
    %3 = tpu.matmul %1, %2, %cst {dimension_numbers = #tpu.dot_dimension_numbers<[1], [0], [0], [1], [0, 0, 1, 1], [], []>} : vector<8x16xbf16>, vector<16x128xbf16>, vector<8x128xf32> -> vector<8x128xf32>
    %c0_3 = arith.constant 0 : index
    %c0_4 = arith.constant 0 : index
    %4 = vector.load %arg3[%c0_3, %c0_4] : memref<1x128xf32, #tpu.memory_space<vmem>>, vector<1x128xf32>
    %5 = vector.broadcast %4 : vector<1x128xf32> to vector<8x128xf32>
    %6 = arith.addf %3, %5 : vector<8x128xf32>
    %cst_5 = arith.constant 0.000000e+00 : f32
    %7 = vector.broadcast %cst_5 : f32 to vector<8x128xf32>
    %8 = arith.maximumf %6, %7 : vector<8x128xf32>
    %9 = arith.truncf %8 : vector<8x128xf32> to vector<8x128xbf16>
    %c0_6 = arith.constant 0 : index
    %c0_7 = arith.constant 0 : index
    %10 = vector.load %arg4[%c0_6, %c0_7] : memref<128x128xbf16, #tpu.memory_space<vmem>>, vector<128x128xbf16>
    %cst_8 = arith.constant dense<0.000000e+00> : vector<8x128xf32>
    %11 = tpu.matmul %9, %10, %cst_8 {dimension_numbers = #tpu.dot_dimension_numbers<[1], [0], [0], [1], [0, 0, 1, 1], [], []>} : vector<8x128xbf16>, vector<128x128xbf16>, vector<8x128xf32> -> vector<8x128xf32>
    %c0_9 = arith.constant 0 : index
    %c0_10 = arith.constant 0 : index
    %12 = vector.load %arg5[%c0_9, %c0_10] : memref<1x128xf32, #tpu.memory_space<vmem>>, vector<1x128xf32>
    %13 = vector.broadcast %12 : vector<1x128xf32> to vector<8x128xf32>
    %14 = arith.addf %11, %13 : vector<8x128xf32>
    %cst_11 = arith.constant 0.000000e+00 : f32
    %15 = vector.broadcast %cst_11 : f32 to vector<8x128xf32>
    %16 = arith.maximumf %14, %15 : vector<8x128xf32>
    %17 = arith.truncf %16 : vector<8x128xf32> to vector<8x128xbf16>
    %c0_12 = arith.constant 0 : index
    %c0_13 = arith.constant 0 : index
    %18 = vector.load %arg6[%c0_12, %c0_13] : memref<128x128xbf16, #tpu.memory_space<vmem>>, vector<128x128xbf16>
    %cst_14 = arith.constant dense<0.000000e+00> : vector<8x128xf32>
    %19 = tpu.matmul %17, %18, %cst_14 {dimension_numbers = #tpu.dot_dimension_numbers<[1], [0], [0], [1], [0, 0, 1, 1], [], []>} : vector<8x128xbf16>, vector<128x128xbf16>, vector<8x128xf32> -> vector<8x128xf32>
    %c0_15 = arith.constant 0 : index
    %c0_16 = arith.constant 0 : index
    %20 = vector.load %arg7[%c0_15, %c0_16] : memref<1x128xf32, #tpu.memory_space<vmem>>, vector<1x128xf32>
    %21 = vector.broadcast %20 : vector<1x128xf32> to vector<8x128xf32>
    %22 = arith.addf %19, %21 : vector<8x128xf32>
    %23 = vector.extract_strided_slice %22 {offsets = [0, 4], sizes = [8, 1], strides = [1, 1]} : vector<8x128xf32> to vector<8x1xf32>
    %c0_17 = arith.constant 0 : index
    %c0_18 = arith.constant 0 : index
    %24 = vector.load %arg8[%c0_17, %c0_18] : memref<1x128xf32, #tpu.memory_space<vmem>>, vector<1x128xf32>
    %25 = vector.broadcast %24 : vector<1x128xf32> to vector<8x128xf32>
    %26 = arith.mulf %22, %25 : vector<8x128xf32>
    %cst_19 = arith.constant dense<0.000000e+00> : vector<8xf32>
    %27 = vector.multi_reduction <add>, %26, %cst_19 [1] : vector<8x128xf32> to vector<8xf32>
    %28 = vector.shape_cast %27 : vector<8xf32> to vector<8x1xf32>
    %cst_20 = arith.constant 2.500000e-01 : f32
    %29 = vector.broadcast %cst_20 : f32 to vector<8x1xf32>
    %30 = arith.mulf %28, %29 : vector<8x1xf32>
    %31 = vector.broadcast %23 : vector<8x1xf32> to vector<8x128xf32>
    %32 = arith.addf %22, %31 : vector<8x128xf32>
    %33 = vector.broadcast %30 : vector<8x1xf32> to vector<8x128xf32>
    %34 = arith.subf %32, %33 : vector<8x128xf32>
    %c0_21 = arith.constant 0 : index
    %c0_22 = arith.constant 0 : index
    %35 = vector.load %arg9[%c0_21, %c0_22] : memref<8x128xf32, #tpu.memory_space<vmem>>, vector<8x128xf32>
    tpu.vector_store %arg9[%c0_21, %c0_22], %34 {strides = array<i32>} : memref<8x128xf32, #tpu.memory_space<vmem>>, vector<8x128xf32>,
    return
  }
  func.func @transform_0(%arg0: i32) -> (i32, i32) {
    %c0_i32 = arith.constant 0 : i32
    %c0_i32_0 = arith.constant 0 : i32
    return %arg0, %c0_i32 : i32, i32
  }
  func.func @transform_1(%arg0: i32) -> (i32, i32) {
    %c0_i32 = arith.constant 0 : i32
    %c0_i32_0 = arith.constant 0 : i32
    %c0_i32_1 = arith.constant 0 : i32
    return %c0_i32, %c0_i32_0 : i32, i32
  }
  func.func @transform_2(%arg0: i32) -> (i32, i32) {
    %c0_i32 = arith.constant 0 : i32
    %c0_i32_0 = arith.constant 0 : i32
    %c0_i32_1 = arith.constant 0 : i32
    return %c0_i32, %c0_i32_0 : i32, i32
  }
  func.func @transform_3(%arg0: i32) -> (i32, i32) {
    %c0_i32 = arith.constant 0 : i32
    %c0_i32_0 = arith.constant 0 : i32
    %c0_i32_1 = arith.constant 0 : i32
    return %c0_i32, %c0_i32_0 : i32, i32
  }
  func.func @transform_4(%arg0: i32) -> (i32, i32) {
    %c0_i32 = arith.constant 0 : i32
    %c0_i32_0 = arith.constant 0 : i32
    %c0_i32_1 = arith.constant 0 : i32
    return %c0_i32, %c0_i32_0 : i32, i32
  }
  func.func @transform_5(%arg0: i32) -> (i32, i32) {
    %c0_i32 = arith.constant 0 : i32
    %c0_i32_0 = arith.constant 0 : i32
    %c0_i32_1 = arith.constant 0 : i32
    return %c0_i32, %c0_i32_0 : i32, i32
  }
  func.func @transform_6(%arg0: i32) -> (i32, i32) {
    %c0_i32 = arith.constant 0 : i32
    %c0_i32_0 = arith.constant 0 : i32
    %c0_i32_1 = arith.constant 0 : i32
    return %c0_i32, %c0_i32_0 : i32, i32
  }
  func.func @transform_7(%arg0: i32) -> (i32, i32) {
    %c0_i32 = arith.constant 0 : i32
    %c0_i32_0 = arith.constant 0 : i32
    %c0_i32_1 = arith.constant 0 : i32
    return %c0_i32, %c0_i32_0 : i32, i32
  }
  func.func @transform_8(%arg0: i32) -> (i32, i32) {
    %c0_i32 = arith.constant 0 : i32
    %c0_i32_0 = arith.constant 0 : i32
    return %arg0, %c0_i32 : i32, i32
  }
}

</mosaic_0001>

<bundles_post_ra>
// kernel: tpu_custom_call.1
= control target key start
LH: loop header
LB: loop body
LE: loop exit
PB: predicated region body
PF: predicated region fallthrough
CT: control target
= control target key end

     0   :  { %13 = vsyncpa [#allocation3], 0  ;;  %s995_s0 = inlined_call_operand.hbm [shape: f32[2,16], index: 0, kind: input, shape index: {}]   ;;  %s996_s1 = inlined_call_operand.hbm [shape: bf16[16,128], index: 1, kind: input, shape index: {}]   ;;  %s997_s2 = inlined_call_operand.hbm [shape: f32[1,128], index: 2, kind: input, shape index: {}]   ;;  %s998_s3 = inlined_call_operand.hbm [shape: bf16[128,128], index: 3, kind: input, shape index: {}]   ;;  %s999_s4 = inlined_call_operand.hbm [shape: f32[1,128], index: 4, kind: input, shape index: {}]   ;;  %s1000_s5 = inlined_call_operand.hbm [shape: bf16[128,128], index: 5, kind: input, shape index: {}]   ;;  %s1001_s6 = inlined_call_operand.hbm [shape: f32[1,128], index: 6, kind: input, shape index: {}]   ;;  %s1002_s7 = inlined_call_operand.hbm [shape: f32[1,128], index: 7, kind: input, shape index: {}]   ;;  %s1003_s8 = inlined_call_operand.hbm [shape: f32[2,128], index: 8, kind: output, shape index: {}]  }
   0x1   :  { %14 = vsyncpa [#allocation6], 0 }
   0x2   :  { %15 = vsyncpa [#allocation9], 0 }
   0x3   :  { %16 = vsyncpa [#allocation12], 0 }
   0x4   :  { %17 = vsyncpa [#allocation15], 0 }
   0x5   :  { %18 = vsyncpa [#allocation4], 0 }
   0x6   :  { %23 = vsyncadd [#allocation3], 96  ;;  %s791_s27 = smov [#allocation5]   ;;  %s581_s9 = scalar_lea.hbm %s996_s1, 128 }
   0x7   :  { %s36_s28 = sshll.u32 %s791_s27, 4  ;;  %p582_p0 = scmp.ne.s32.totalorder %s996_s1, %s581_s9  ;;  %s37_s28 = int_to_ptr.vmem [resolvable:$true] %s36_s28 }
   0x8   :  { %p585_p1 = scmp.lt.u32.totalorder %s581_s9, %s996_s1 }
   0xa   :  { %p587_p2 = pnand %p585_p1, %p582_p0 }
   0xc   :  { %590 = shalt.err (!%p587_p2)
}
   0xd   :  { %s591_s14 = scalar_lea.vmem %s37_s28, 128  ;;  %p596_p4 = scmp.lt.s32.totalorder %s37_s28, %s37_s28 }
   0xe   :  { %p592_p3 = scmp.ne.s32.totalorder %s37_s28, %s591_s14  ;;  %p597_p5 = scmp.lt.s32.totalorder %s591_s14, %s591_s14 }
  0x10   :  { %p598_p6 = por %p597_p5, %p596_p4 }
  0x12   :  { %p599_p7 = pnand %p598_p6, %p592_p3 }
  0x14   :  { %602 = shalt.err (!%p599_p7)
}
  0x15   :  { %s792_s15 = smov 64   ;;  %s793_s16 = smov 4  }
  0x16   :  { %42 = dma.hbm_to_vmem [thread:$0]  %s996_s1, 128, %s37_s28, [#allocation6], %s792_s15, %s792_s15, %s793_s16  }
  0x17   :  { %s794_s19 = smov [#allocation8]   ;;  %s795_s21 = smov [#allocation11]  }
  0x18   :  { %s58_s20 = sshll.u32 %s794_s19, 4  ;;  %s80_s22 = sshll.u32 %s795_s21, 4  ;;  %s59_s20 = int_to_ptr.vmem [resolvable:$true] %s58_s20  ;;  %s81_s22 = int_to_ptr.vmem [resolvable:$true] %s80_s22 }
  0x19   :  { %s603_s25 = scalar_lea.hbm %s998_s3, 1024 }
  0x1a   :  { %p604_p8 = scmp.ne.s32.totalorder %s998_s3, %s603_s25  ;;  %p607_p9 = scmp.lt.u32.totalorder %s603_s25, %s998_s3 }
  0x1c   :  { %p609_p10 = pnand %p607_p9, %p604_p8 }
  0x1e   :  { %612 = shalt.err (!%p609_p10)
}
  0x1f   :  { %s613_s1 = scalar_lea.vmem %s59_s20, 1024  ;;  %p618_p12 = scmp.lt.s32.totalorder %s59_s20, %s59_s20 }
  0x20   :  { %p614_p11 = scmp.ne.s32.totalorder %s59_s20, %s613_s1  ;;  %p619_p13 = scmp.lt.s32.totalorder %s613_s1, %s613_s1 }
  0x22   :  { %p620_p0 = por %p619_p13, %p618_p12 }
  0x24   :  { %p621_p1 = pnand %p620_p0, %p614_p11 }
  0x26   :  { %624 = shalt.err (!%p621_p1)
}
  0x27   :  { %64 = dma.hbm_to_vmem [thread:$0]  %s998_s3, 1024, %s59_s20, [#allocation9], %s792_s15, %s792_s15, %s793_s16  }
  0x28   :  { %s625_s12 = scalar_lea.hbm %s1000_s5, 1024 }
  0x29   :  { %p626_p2 = scmp.ne.s32.totalorder %s1000_s5, %s625_s12  ;;  %p629_p3 = scmp.lt.u32.totalorder %s625_s12, %s1000_s5 }
  0x2b   :  { %p631_p4 = pnand %p629_p3, %p626_p2 }
  0x2d   :  { %634 = shalt.err (!%p631_p4)
}
  0x2e   :  { %s635_s19 = scalar_lea.vmem %s81_s22, 1024  ;;  %p640_p6 = scmp.lt.s32.totalorder %s81_s22, %s81_s22 }
  0x2f   :  { %p636_p5 = scmp.ne.s32.totalorder %s81_s22, %s635_s19  ;;  %p641_p7 = scmp.lt.s32.totalorder %s635_s19, %s635_s19 }
  0x31   :  { %p642_p8 = por %p641_p7, %p640_p6 }
  0x33   :  { %p643_p9 = pnand %p642_p8, %p636_p5 }
  0x35   :  { %646 = shalt.err (!%p643_p9)
}
  0x36   :  { %86 = dma.hbm_to_vmem [thread:$0]  %s1000_s5, 1024, %s81_s22, [#allocation12], %s792_s15, %s792_s15, %s793_s16  }
  0x37   :  { %s796_s21 = smov [#allocation2]   ;;  %s647_s26 = scalar_lea.hbm %s995_s0, 32 }
  0x38   :  { %s24_s23 = sshll.u32 %s796_s21, 4  ;;  %p648_p10 = scmp.ne.s32.totalorder %s995_s0, %s647_s26  ;;  %s25_s23 = int_to_ptr.vmem [resolvable:$true] %s24_s23 }
  0x39   :  { %p651_p11 = scmp.lt.u32.totalorder %s647_s26, %s995_s0 }
  0x3b   :  { %p653_p12 = pnand %p651_p11, %p648_p10 }
  0x3d   :  { %656 = shalt.err (!%p653_p12)
}
  0x3e   :  { %s657_s28 = scalar_lea.vmem %s25_s23, 32  ;;  %s661_s5 = scalar_lea.vmem %s25_s23, 128 }
  0x3f   :  { %p658_p13 = scmp.ne.s32.totalorder %s25_s23, %s657_s28  ;;  %p662_p0 = scmp.lt.s32.totalorder %s25_s23, %s25_s23 }
  0x40   :  { %p663_p1 = scmp.lt.s32.totalorder %s661_s5, %s657_s28 }
  0x42   :  { %p664_p2 = por %p663_p1, %p662_p0 }
  0x44   :  { %p665_p3 = pnand %p664_p2, %p658_p13 }
  0x46   :  { %668 = shalt.err (!%p665_p3)
}
  0x47   :  { %s797_s15 = smov 32   ;;  %s798_s16 = smov 2  }
  0x48   :  { %30 = dma.hbm_to_vmem [thread:$0]  %s995_s0, 32, %s25_s23, [#allocation3], %s797_s15, %s797_s15, %s798_s16  }
  0x49   :  { %s799_s10 = smov [#allocation7]   ;;  %s800_s12 = smov [#allocation10]  }
  0x4a   :  { %s49_s11 = sshll.u32 %s799_s10, 4  ;;  %s71_s13 = sshll.u32 %s800_s12, 4  ;;  %s50_s11 = int_to_ptr.vmem [resolvable:$true] %s49_s11  ;;  %s72_s13 = int_to_ptr.vmem [resolvable:$true] %s71_s13 }
  0x4b   :  { %s669_s18 = scalar_lea.hbm %s997_s2, 16 }
  0x4c   :  { %p670_p4 = scmp.ne.s32.totalorder %s997_s2, %s669_s18  ;;  %p673_p5 = scmp.lt.u32.totalorder %s669_s18, %s997_s2 }
  0x4e   :  { %p675_p6 = pnand %p673_p5, %p670_p4 }
  0x50   :  { %678 = shalt.err (!%p675_p6)
}
  0x51   :  { %s679_s0 = scalar_lea.vmem %s50_s11, 16  ;;  %s683_s23 = scalar_lea.vmem %s50_s11, 32 }
  0x52   :  { %p680_p7 = scmp.ne.s32.totalorder %s50_s11, %s679_s0  ;;  %p684_p8 = scmp.lt.s32.totalorder %s50_s11, %s50_s11 }
  0x53   :  { %p685_p9 = scmp.lt.s32.totalorder %s683_s23, %s679_s0 }
  0x55   :  { %p686_p10 = por %p685_p9, %p684_p8 }
  0x57   :  { %p687_p11 = pnand %p686_p10, %p680_p7 }
  0x59   :  { %690 = shalt.err (!%p687_p11)
}
  0x5a   :  { %52 = dma.hbm_to_vmem [thread:$0]  %s997_s2, 16, %s50_s11, [#allocation6]  }
  0x5b   :  { %s691_s29 = scalar_lea.hbm %s999_s4, 16 }
  0x5c   :  { %p692_p12 = scmp.ne.s32.totalorder %s999_s4, %s691_s29  ;;  %p695_p13 = scmp.lt.u32.totalorder %s691_s29, %s999_s4 }
  0x5e   :  { %p697_p0 = pnand %p695_p13, %p692_p12 }
  0x60   :  { %700 = shalt.err (!%p697_p0)
}
  0x61   :  { %s701_s22 = scalar_lea.vmem %s72_s13, 16  ;;  %s705_s9 = scalar_lea.vmem %s72_s13, 32 }
  0x62   :  { %p702_p1 = scmp.ne.s32.totalorder %s72_s13, %s701_s22  ;;  %p706_p2 = scmp.lt.s32.totalorder %s72_s13, %s72_s13 }
  0x63   :  { %p707_p3 = scmp.lt.s32.totalorder %s705_s9, %s701_s22 }
  0x65   :  { %p708_p4 = por %p707_p3, %p706_p2 }
  0x67   :  { %p709_p5 = pnand %p708_p4, %p702_p1 }
  0x69   :  { %712 = shalt.err (!%p709_p5)
}
  0x6a   :  { %74 = dma.hbm_to_vmem [thread:$0]  %s999_s4, 16, %s72_s13, [#allocation9]  }
  0x6b   :  { %s801_s11 = smov [#allocation13]   ;;  %s802_s14 = smov [#allocation14]  }
  0x6c   :  { %s93_s12 = sshll.u32 %s801_s11, 4  ;;  %s103_s17 = sshll.u32 %s802_s14, 4  ;;  %s94_s12 = int_to_ptr.vmem [resolvable:$true] %s93_s12  ;;  %s104_s17 = int_to_ptr.vmem [resolvable:$true] %s103_s17 }
  0x6d   :  { %s713_s3 = scalar_lea.hbm %s1001_s6, 16 }
  0x6e   :  { %p714_p6 = scmp.ne.s32.totalorder %s1001_s6, %s713_s3  ;;  %p717_p7 = scmp.lt.u32.totalorder %s713_s3, %s1001_s6 }
  0x70   :  { %p719_p8 = pnand %p717_p7, %p714_p6 }
  0x72   :  { %722 = shalt.err (!%p719_p8)
}
  0x73   :  { %s723_s4 = scalar_lea.vmem %s94_s12, 16  ;;  %s727_s13 = scalar_lea.vmem %s94_s12, 32 }
  0x74   :  { %p724_p9 = scmp.ne.s32.totalorder %s94_s12, %s723_s4  ;;  %p728_p10 = scmp.lt.s32.totalorder %s94_s12, %s94_s12 }
  0x75   :  { %p729_p11 = scmp.lt.s32.totalorder %s727_s13, %s723_s4 }
  0x77   :  { %p730_p12 = por %p729_p11, %p728_p10 }
  0x79   :  { %p731_p13 = pnand %p730_p12, %p724_p9 }
  0x7b   :  { %734 = shalt.err (!%p731_p13)
}
  0x7c   :  { %96 = dma.hbm_to_vmem [thread:$0]  %s1001_s6, 16, %s94_s12, [#allocation12]  }
  0x7d   :  { %s735_s29 = scalar_lea.hbm %s1002_s7, 16 }
  0x7e   :  { %p736_p0 = scmp.ne.s32.totalorder %s1002_s7, %s735_s29  ;;  %p739_p1 = scmp.lt.u32.totalorder %s735_s29, %s1002_s7 }
  0x80   :  { %p741_p2 = pnand %p739_p1, %p736_p0 }
  0x82   :  { %744 = shalt.err (!%p741_p2)
}
  0x83   :  { %s745_s22 = scalar_lea.vmem %s104_s17, 16  ;;  %s749_s9 = scalar_lea.vmem %s104_s17, 32 }
  0x84   :  { %p746_p3 = scmp.ne.s32.totalorder %s104_s17, %s745_s22  ;;  %p750_p4 = scmp.lt.s32.totalorder %s104_s17, %s104_s17 }
  0x85   :  { %p751_p5 = scmp.lt.s32.totalorder %s749_s9, %s745_s22 }
  0x87   :  { %p752_p6 = por %p751_p5, %p750_p4 }
  0x89   :  { %p753_p7 = pnand %p752_p6, %p746_p3 }
  0x8b   :  { %756 = shalt.err (!%p753_p7)
}
  0x8c   :  { %106 = dma.hbm_to_vmem [thread:$0]  %s1002_s7, 16, %s104_s17, [#allocation15]  }
  0x8d   :  { %779 = dma.done.wait [#allocation3], 128  }
  0x8e   :  { %780 = vsyncadd [#allocation3], 4294967168 }
  0x8f   :  { %781 = dma.done.wait [#allocation6], 144  }
  0x90   :  { %782 = vsyncadd [#allocation6], 4294967152 }
  0x91   :  { %783 = dma.done.wait [#allocation9], 1040  }
  0x92   :  { %784 = vsyncadd [#allocation9], 4294966256 }
  0x93   :  { %785 = dma.done.wait [#allocation12], 1040  }
  0x94   :  { %786 = vsyncadd [#allocation12], 4294966256 }
  0x95   :  { %787 = dma.done.wait [#allocation15], 16  }
  0x96   :  { %788 = vsyncadd [#allocation15], 4294967280  ;;  %v803_v0 = vmov 0.0   ;;  %vm804_vm0 = vmmov 0   ;;  %v564_v1 = vld [vmem:[#allocation5] sm:$0xff]   ;;  %v132_v2 = vld [vmem:[#allocation2] sm:$0xff] }
  0x97   :  { %501 = vmatprep.subr.bf16.mxu0 %v803_v0  ;;  %503 = vmatprep.mubr.msk.bf16.mxu0 %vm804_vm0, %v803_v0  ;;  %v133_v3 = vpack.c.bf16 %v132_v2, %v132_v2  ;;  %vm149_vm1 = vcmask 130048   ;;  %v565_v4 = vld [vmem:[#allocation8] sm:$0xff]   ;;  %v566_v5 = vld [vmem:[#allocation8 + $0x8] sm:$0xff]   ;;  %v567_v6 = vld [vmem:[#allocation8 + $0x10] sm:$0xff]   ;;  %v805_v36 = vmov 4  }
  0x98   :  { %507 = vmatprep.subr.bf16.mxu1 %v803_v0  ;;  %523 = vmatprep.mubr.msk.bf16.mxu1 %vm804_vm0, %v803_v0  ;;  %v568_v7 = vld [vmem:[#allocation8 + $0x18] sm:$0xff]   ;;  %v569_v8 = vld [vmem:[#allocation8 + $0x20] sm:$0xff]   ;;  %v570_v9 = vld [vmem:[#allocation8 + $0x28] sm:$0xff]  }
  0x99   :  { %502 = vmatpush3.bf16.msra.mxu0 %v564_v1  ;;  %508 = vmatpush3.bf16.msra.mxu1 %v565_v4  ;;  %v571_v10 = vld [vmem:[#allocation8 + $0x30] sm:$0xff]   ;;  %v572_v11 = vld [vmem:[#allocation8 + $0x38] sm:$0xff]   ;;  %v573_v12 = vld [vmem:[#allocation11] sm:$0xff]  }
  0x9a   :  { %527 = vmatprep.subr.bf16.mxu0 %v803_v0  ;;  %509 = vmatprep.subr.bf16.mxu1 %v803_v0  ;;  %v574_v13 = vld [vmem:[#allocation11 + $0x8] sm:$0xff]   ;;  %v575_v14 = vld [vmem:[#allocation11 + $0x10] sm:$0xff]   ;;  %v576_v15 = vld [vmem:[#allocation11 + $0x18] sm:$0xff]  }
  0x9b   :  { %v577_v16 = vld [vmem:[#allocation11 + $0x20] sm:$0xff]   ;;  %v578_v17 = vld [vmem:[#allocation11 + $0x28] sm:$0xff]   ;;  %v459_v18 = vld [vmem:[#allocation7] ss:$0 sm:$0xff]  ;;  %563 = vset.pattern.permute.xlu0 %v805_v36 }
  0x9c   :  { %504 = vmatmul.mubr.msk.bf16.vlgmr.msra.gmra.mrb[0].mxu0 %vm149_vm1, %v133_v3  ;;  %v579_v26 = vld [vmem:[#allocation11 + $0x30] sm:$0xff]   ;;  %v580_v27 = vld [vmem:[#allocation11 + $0x38] sm:$0xff]   ;;  %v471_v37 = vld [vmem:[#allocation13] ss:$0 sm:$0xff] }
  0x9d   :  { %543 = vmatprep.mubr.msk.bf16.mxu0 %vm804_vm0, %v803_v0  ;;  %510 = vmatpush3.bf16.msra.mxu1 %v566_v5  ;;  %v462_v28 = vld [vmem:[#allocation10] ss:$0 sm:$0xff]  ;;  %v480_v39 = vld [vmem:[#allocation14] ss:$0 sm:$0xff] }
  0x9e   :  { %511 = vmatprep.subr.bf16.mxu1 %v803_v0  ;;  %528 = vmatpush3.bf16.msra.mxu0 %v573_v12 }
  0x9f   :  { %529 = vmatprep.subr.bf16.mxu0 %v803_v0 }
  0xa1   :  { %512 = vmatpush3.bf16.msra.mxu1 %v567_v6 }
  0xa2   :  { %513 = vmatprep.subr.bf16.mxu1 %v803_v0  ;;  %530 = vmatpush3.bf16.msra.mxu0 %v574_v13 }
  0xa3   :  { %531 = vmatprep.subr.bf16.mxu0 %v803_v0 }
  0xa5   :  { %514 = vmatpush3.bf16.msra.mxu1 %v568_v7 }
  0xa6   :  { %515 = vmatprep.subr.bf16.mxu1 %v803_v0  ;;  %532 = vmatpush3.bf16.msra.mxu0 %v575_v14 }
  0xa7   :  { %533 = vmatprep.subr.bf16.mxu0 %v803_v0 }
  0xa9   :  { %516 = vmatpush3.bf16.msra.mxu1 %v569_v8 }
  0xaa   :  { %517 = vmatprep.subr.bf16.mxu1 %v803_v0  ;;  %534 = vmatpush3.bf16.msra.mxu0 %v576_v15 }
  0xab   :  { %535 = vmatprep.subr.bf16.mxu0 %v803_v0 }
  0xad   :  { %518 = vmatpush3.bf16.msra.mxu1 %v570_v9 }
  0xae   :  { %519 = vmatprep.subr.bf16.mxu1 %v803_v0  ;;  %536 = vmatpush3.bf16.msra.mxu0 %v577_v16 }
  0xaf   :  { %537 = vmatprep.subr.bf16.mxu0 %v803_v0 }
  0xb1   :  { %520 = vmatpush3.bf16.msra.mxu1 %v571_v10 }
  0xb2   :  { %521 = vmatprep.subr.bf16.mxu1 %v803_v0  ;;  %538 = vmatpush3.bf16.msra.mxu0 %v578_v17 }
  0xb3   :  { %539 = vmatprep.subr.bf16.mxu0 %v803_v0 }
  0xb5   :  { %522 = vmatpush3.bf16.msra.mxu1 %v572_v11 }
  0xb6   :  { %540 = vmatpush3.bf16.msra.mxu0 %v579_v26 }
  0xb7   :  { %541 = vmatprep.subr.bf16.mxu0 %v803_v0 }
  0xba   :  { %542 = vmatpush3.bf16.msra.mxu0 %v580_v27 }
 0x16f   :  { %v187_v19 = vpop.f32.mrb[0].mxu0 }
 0x170   :  { %v188_v20 = vadd.f32 %v459_v18, %v187_v19  ;;  %v505_v21 = vpop.f32.mrb[1].mxu0 }
 0x171   :  { %v190_v22 = vpop.f32.mrb[2].mxu0 }
 0x172   :  { %v193_v23 = vmax.f32 %v188_v20, 0.0  ;;  %v506_v24 = vpop.f32.mrb[3].mxu0 }
 0x174   :  { %v194_v25 = vpack.c.bf16 %v193_v23, %v193_v23 }
 0x176   :  { %524 = vmatmul.mubr.bf16.vlgmr.msra.gmra.mrb[0].mxu1 %v194_v25 }
 0x249   :  { %v300_v29 = vpop.f32.mrb[0].mxu1 }
 0x24a   :  { %v301_v30 = vadd.f32 %v462_v28, %v300_v29  ;;  %v525_v31 = vpop.f32.mrb[1].mxu1 }
 0x24b   :  { %v303_v32 = vpop.f32.mrb[2].mxu1 }
 0x24c   :  { %v306_v33 = vmax.f32 %v301_v30, 0.0  ;;  %v526_v34 = vpop.f32.mrb[3].mxu1 }
 0x24e   :  { %v307_v35 = vpack.c.bf16 %v306_v33, %v306_v33 }
 0x250   :  { %544 = vmatmul.mubr.bf16.vlgmr.msra.gmra.mrb[4].mxu0 %v307_v35 }
 0x323   :  { %v413_v38 = vpop.f32.mrb[4].mxu0 }
 0x324   :  { %v414_v40 = vadd.f32 %v471_v37, %v413_v38  ;;  %v545_v41 = vpop.f32.mrb[5].mxu0 }
 0x325   :  { %v416_v42 = vpop.f32.mrb[6].mxu0 }
 0x326   :  { %v546_v43 = vpop.f32.mrb[7].mxu0  ;;  %v426_v44 = vmul.f32 %v480_v39, %v414_v40 }
 0x328   :  { %427 = vadd.xlane.f32.xlu0 %v426_v44 }
 0x33e   :  { %432 = vperm.xlu0 %563, %v414_v40  }
 0x3b5   :  { %v428_v45 = vpop.xlane.xlu0 %427 }
 0x3b6   :  { %v429_v47 = vmul.f32 0.25, %v428_v45 }
 0x3bd   :  { %v433_v46 = vpop.permute.xlu0 %432 }
 0x3be   :  { %v435_v48 = vadd.f32 %v433_v46, %v414_v40 }
 0x3c0   :  { %v436_v49 = vsub.f32 %v435_v48, %v429_v47 }
 0x3c2   :  { %437 = vst [vmem:[#allocation16] sm:$0xff] %v436_v49 }
 0x3c3   :  { %442 = vsyncadd [#allocation4], 96  ;;  %s806_s7 = smov [#allocation16]  }
 0x3c4   :  { %s443_s10 = sshll.u32 %s806_s7, 4  ;;  %s444_s10 = int_to_ptr.vmem [resolvable:$true] %s443_s10 }
 0x3c5   :  { %s757_s11 = scalar_lea.vmem %s444_s10, 32  ;;  %s761_s12 = scalar_lea.vmem %s444_s10, 128 }
 0x3c6   :  { %p758_p8 = scmp.ne.s32.totalorder %s444_s10, %s757_s11  ;;  %p762_p9 = scmp.lt.s32.totalorder %s444_s10, %s444_s10 }
 0x3c7   :  { %p763_p10 = scmp.lt.s32.totalorder %s761_s12, %s757_s11 }
 0x3c9   :  { %p764_p11 = por %p763_p10, %p762_p9 }
 0x3cb   :  { %p765_p12 = pnand %p764_p11, %p758_p8 }
 0x3cd   :  { %768 = shalt.err (!%p765_p12)
}
 0x3ce   :  { %s769_s18 = scalar_lea.hbm %s1003_s8, 32 }
 0x3cf   :  { %p770_p13 = scmp.ne.s32.totalorder %s1003_s8, %s769_s18  ;;  %p773_p0 = scmp.lt.u32.totalorder %s769_s18, %s1003_s8 }
 0x3d1   :  { %p775_p1 = pnand %p773_p0, %p770_p13 }
 0x3d3   :  { %778 = shalt.err (!%p775_p1)
}
 0x3d4   :  { %449 = dma.vmem_to_hbm [thread:$0]  %s444_s10, 32, %s1003_s8, [#allocation4], %s797_s15, %s797_s15, %s798_s16  }
 0x3d5   :  { %789 = dma.done.wait [#allocation4], 128  }
 0x3d6   :  { %790 = vsyncadd [#allocation4], 4294967168 }
 0x3d7   :  { %453 = vsyncpa [#allocation3], 1 }
 0x3d8   :  { %454 = vsyncpa [#allocation6], 1 }
 0x3d9   :  { %455 = vsyncpa [#allocation9], 1 }
 0x3da   :  { %456 = vsyncpa [#allocation12], 1 }
 0x3db   :  { %457 = vsyncpa [#allocation15], 1 }
 0x3dc   :  { %458 = vsyncpa [#allocation4], 1 }

</bundles_post_ra>
